<compile_context>
chip_gen: v7x
topology: tpu7x:2x2x1
jax: 0.10.0
libtpu: 0.0.40
codegen_flags: <defaults>
</compile_context>

<pallas_src>
import functools

import jax
import jax.numpy as jnp
from jax.experimental import pallas as pl
from jax.experimental.pallas import tpu as pltpu

H1, H2 = 512, 256        # hidden widths from Classifier.__init__
LANE = 128               # TPU lane width
SUBLANE_BF16 = 16        # bf16 sublane packing


def _round_up(n, m):
    return (n + m - 1) // m * m


def _classifier_kernel(x_ref, w1_ref, w2_ref, w3_ref, vec_ref, o_ref, *, c_pad):
    """Fused 3-layer MLP head for one batch tile. Weights VMEM-resident."""
    x = x_ref[...]                                                   # (TB, E) bf16

    # Linear1 (BN1 scale pre-folded into W1 columns) + BN1 shift + ReLU.
    h1 = jnp.dot(x, w1_ref[...], preferred_element_type=jnp.float32)  # (TB, 512) f32
    # Cast to bf16 right away so the live intermediate (and any spill) is half-size.
    h1 = jnp.maximum(h1 + vec_ref[:, 0:H1], 0.0).astype(jnp.bfloat16)
    # Dropout (eval mode) == identity.

    # Linear2 (BN2 scale pre-folded) + BN2 shift + ReLU.
    h2 = jnp.dot(h1, w2_ref[...], preferred_element_type=jnp.float32)  # (TB, 256) f32
    h2 = jnp.maximum(h2 + vec_ref[:, H1:H1 + H2], 0.0).astype(jnp.bfloat16)

    # Linear3 + bias (lane-padded to c_pad columns); store in bf16.
    out = jnp.dot(h2, w3_ref[...], preferred_element_type=jnp.float32)  # (TB, c_pad)
    o_ref[...] = (out + vec_ref[:, H1 + H2:H1 + H2 + c_pad]).astype(o_ref.dtype)


def classifier_forward(x, params, *, tile_b=512):
    """x: (B, emb_dims) float32. Returns (B, output_channels) float32."""
    B, E = x.shape
    C = params["out_channels"]
    c_pad = params["w3"].shape[1]
    vec_w = params["vec"].shape[1]

    # ---- Batch tiling -------------------------------------------------------
    # Tile is a multiple of the bf16 sublane tile.  For large B, tile_b (=512
    # default) keeps us in the high-roofline regime; for batches that would fit
    # in a single tile we split into (at least) two tiles so the "parallel"
    # batch axis can use both TensorCores on v7x.
    b16 = _round_up(B, SUBLANE_BF16)
    tb = min(_round_up(tile_b, SUBLANE_BF16), b16)
    if b16 <= tb and b16 >= 2 * SUBLANE_BF16:
        tb = _round_up(pl.cdiv(b16, 2), SUBLANE_BF16)
    b_pad = _round_up(B, tb)
    grid = (b_pad // tb,)

    x_p = x
    if b_pad != B:
        x_p = jnp.pad(x, ((0, b_pad - B), (0, 0)))
    x_p = x_p.astype(jnp.bfloat16)

    # ---- VMEM budget (explicit scoped limit, portable across generations) ---
    bytes_x = 2 * tb * E * 2                      # bf16 x tile, double-buffered
    bytes_out = 2 * tb * c_pad * 2                # bf16 out tile, double-buffered
    bytes_w = (E * H1 + H1 * H2 + H2 * c_pad) * 2 + vec_w * 4   # single-buffered
    bytes_mid = tb * (H1 + H2 + c_pad) * 4 * 2    # f32 accumulators / temps (generous)
    vmem_limit = int(min(max(1.5 * (bytes_x + bytes_out + bytes_w + bytes_mid),
                             16 * 2 ** 20), 64 * 2 ** 20))

    # ---- Cost estimate (helps XLA overlap neighbouring ops) -----------------
    flops = 2 * b_pad * (E * H1 + H1 * H2 + H2 * c_pad)
    bytes_accessed = (b_pad * E * 2                      # x (bf16)
                      + (E * H1 + H1 * H2 + H2 * c_pad) * 2  # weights (bf16)
                      + vec_w * 4                        # shifts/bias (f32)
                      + b_pad * c_pad * 2)               # out (bf16)
    cost = pl.CostEstimate(flops=flops, transcendentals=0,
                           bytes_accessed=bytes_accessed)

    kernel = pl.pallas_call(
        functools.partial(_classifier_kernel, c_pad=c_pad),
        out_shape=jax.ShapeDtypeStruct((b_pad, c_pad), jnp.bfloat16),
        grid=grid,
        in_specs=[
            # x: tiled over batch (default double-buffered pipeline).
            pl.BlockSpec((tb, E), lambda i: (i, 0)),
            # Weights / shift vector: constant index_map -> keep a single VMEM
            # copy resident across all grid steps (no wasted double buffer).
            pl.BlockSpec((E, H1), lambda i: (0, 0), pipeline_mode=pl.Buffered(1)),
            pl.BlockSpec((H1, H2), lambda i: (0, 0), pipeline_mode=pl.Buffered(1)),
            pl.BlockSpec((H2, c_pad), lambda i: (0, 0), pipeline_mode=pl.Buffered(1)),
            pl.BlockSpec((1, vec_w), lambda i: (0, 0), pipeline_mode=pl.Buffered(1)),
        ],
        out_specs=pl.BlockSpec((tb, c_pad), lambda i: (i, 0)),
        compiler_params=pltpu.CompilerParams(
            dimension_semantics=("parallel",),
            vmem_limit_bytes=vmem_limit),
        cost_estimate=cost,
    )
    out = kernel(x_p, params["w1"], params["w2"], params["w3"], params["vec"])
    return out[:B, :C].astype(jnp.float32)


def make_params(key, emb_dims, output_channels):
    """Deterministic synthetic parameters (shapes from Classifier.__init__),
    pre-processed for the kernel: BN scales folded into weight columns,
    weights in bf16, output lane-padded to 128, shifts/bias concatenated."""
    ks = jax.random.split(key, 12)
    eps = 1e-5
    c_pad = _round_up(max(output_channels, 1), LANE)

    def fold_bn(gamma, beta, run_mean, run_var):
        scale = gamma / jnp.sqrt(run_var + eps)
        shift = beta - run_mean * scale
        return scale, shift

    # Linear weights, stored transposed vs. PyTorch: (in_features, out_features)
    w1 = jax.random.normal(ks[0], (emb_dims, H1), jnp.float32) * 0.05
    w2 = jax.random.normal(ks[1], (H1, H2), jnp.float32) * 0.05
    w3 = jax.random.normal(ks[2], (H2, output_channels), jnp.float32) * 0.05
    b3 = jax.random.normal(ks[3], (output_channels,), jnp.float32) * 0.05

    # BatchNorm1d(512) running stats / affine params (eval mode).
    g1 = 1.0 + 0.1 * jax.random.normal(ks[4], (H1,), jnp.float32)
    be1 = 0.1 * jax.random.normal(ks[5], (H1,), jnp.float32)
    rm1 = 0.1 * jax.random.normal(ks[6], (H1,), jnp.float32)
    rv1 = 1.0 + 0.1 * jax.random.uniform(ks[7], (H1,), jnp.float32)
    s1, t1 = fold_bn(g1, be1, rm1, rv1)

    # BatchNorm1d(256).
    g2 = 1.0 + 0.1 * jax.random.normal(ks[8], (H2,), jnp.float32)
    be2 = 0.1 * jax.random.normal(ks[9], (H2,), jnp.float32)
    rm2 = 0.1 * jax.random.normal(ks[10], (H2,), jnp.float32)
    rv2 = 1.0 + 0.1 * jax.random.uniform(ks[11], (H2,), jnp.float32)
    s2, t2 = fold_bn(g2, be2, rm2, rv2)

    # Fold BN scales into weight columns; quantize weights to bf16.
    w1_k = (w1 * s1[None, :]).astype(jnp.bfloat16)
    w2_k = (w2 * s2[None, :]).astype(jnp.bfloat16)
    # Lane-pad the final projection and its bias to a multiple of 128.
    w3_k = jnp.zeros((H2, c_pad), jnp.float32)
    w3_k = w3_k.at[:, :output_channels].set(w3).astype(jnp.bfloat16)
    b3_p = jnp.zeros((c_pad,), jnp.float32).at[:output_channels].set(b3)

    # Single (1, 512+256+c_pad) f32 operand: bn1_shift | bn2_shift | b3.
    vec = jnp.concatenate([t1, t2, b3_p])[None, :]

    return {
        "w1": w1_k, "w2": w2_k, "w3": w3_k, "vec": vec,
        "out_channels": output_channels,
    }


def reference_forward(x, params):
    """Pure-JAX reference that mirrors the kernel's numerics (bf16 operands and
    intermediates, f32 accumulation, bf16 output) so the comparison isolates
    kernel correctness."""
    C = params["out_channels"]
    w1 = params["w1"].astype(jnp.float32)
    w2 = params["w2"].astype(jnp.float32)
    w3 = params["w3"].astype(jnp.float32)
    vec = params["vec"]

    xb = x.astype(jnp.bfloat16).astype(jnp.float32)
    h1 = jnp.maximum(xb @ w1 + vec[:, 0:H1], 0.0)
    h1 = h1.astype(jnp.bfloat16).astype(jnp.float32)
    h2 = jnp.maximum(h1 @ w2 + vec[:, H1:H1 + H2], 0.0)
    h2 = h2.astype(jnp.bfloat16).astype(jnp.float32)
    out = h2 @ w3 + vec[:, H1 + H2:]
    out = out.astype(jnp.bfloat16).astype(jnp.float32)
    return out[:, :C]


if __name__ == "__main__":
    key = jax.random.PRNGKey(0)
    k_param, k_x = jax.random.split(key)

    B = 8            # batch
    EMB_DIMS = 128   # emb_dims
    OUT = 16         # output_channels

    params = make_params(k_param, EMB_DIMS, OUT)
    x = jax.random.normal(k_x, (B, EMB_DIMS), jnp.float32)

    out = classifier_forward(x, params)
    out = jax.block_until_ready(out)

    ref = reference_forward(x, params)
    assert out.shape == (B, OUT), out.shape
    assert jnp.allclose(out, ref, atol=1e-2, rtol=1e-2), "mismatch vs reference"

    print("KERNEL_OK")
</pallas_src>

<mosaic_0001>
module attributes {stable_mosaic.version = 11 : i64} {
  func.func @_classifier_kernel(%arg0: i32, %arg1: memref<16x128xbf16, #tpu.memory_space<vmem>>, %arg2: memref<128x512xbf16, #tpu.memory_space<vmem>>, %arg3: memref<512x256xbf16, #tpu.memory_space<vmem>>, %arg4: memref<256x128xbf16, #tpu.memory_space<vmem>>, %arg5: memref<1x896xf32, #tpu.memory_space<vmem>>, %arg6: memref<16x128xbf16, #tpu.memory_space<vmem>>) attributes {dimension_semantics = [#tpu.dimension_semantics<parallel>], iteration_bounds = array<i64: 1>, scalar_prefetch = 0 : i64, scratch_operands = 0 : i64, tpu.core_type = #tpu.core_type<tc>, window_params = [{transform_indices = @transform_0, window_bounds = array<i64: 16, 128>}, {pipeline_mode = #tpu.pipeline_mode<synchronous>, transform_indices = @transform_1, window_bounds = array<i64: 128, 512>}, {pipeline_mode = #tpu.pipeline_mode<synchronous>, transform_indices = @transform_2, window_bounds = array<i64: 512, 256>}, {pipeline_mode = #tpu.pipeline_mode<synchronous>, transform_indices = @transform_3, window_bounds = array<i64: 256, 128>}, {pipeline_mode = #tpu.pipeline_mode<synchronous>, transform_indices = @transform_4, window_bounds = array<i64: 1, 896>}, {transform_indices = @transform_5, window_bounds = array<i64: 16, 128>}]} {
    %c0 = arith.constant 0 : index
    %c0_0 = arith.constant 0 : index
    %0 = vector.load %arg1[%c0, %c0_0] : memref<16x128xbf16, #tpu.memory_space<vmem>>, vector<16x128xbf16>
    %c0_1 = arith.constant 0 : index
    %c0_2 = arith.constant 0 : index
    %1 = vector.load %arg2[%c0_1, %c0_2] : memref<128x512xbf16, #tpu.memory_space<vmem>>, vector<128x512xbf16>
    %cst = arith.constant dense<0.000000e+00> : vector<16x512xf32>
    %2 = tpu.matmul %0, %1, %cst {dimension_numbers = #tpu.dot_dimension_numbers<[1], [0], [0], [1], [0, 0, 1, 1], [], []>} : vector<16x128xbf16>, vector<128x512xbf16>, vector<16x512xf32> -> vector<16x512xf32>
    %c0_3 = arith.constant 0 : index
    %c0_4 = arith.constant 0 : index
    %3 = vector.load %arg5[%c0_3, %c0_4] : memref<1x896xf32, #tpu.memory_space<vmem>>, vector<1x512xf32>
    %4 = vector.broadcast %3 : vector<1x512xf32> to vector<16x512xf32>
    %5 = arith.addf %2, %4 : vector<16x512xf32>
    %cst_5 = arith.constant 0.000000e+00 : f32
    %6 = vector.broadcast %cst_5 : f32 to vector<16x512xf32>
    %7 = arith.maximumf %5, %6 : vector<16x512xf32>
    %8 = arith.truncf %7 : vector<16x512xf32> to vector<16x512xbf16>
    %c0_6 = arith.constant 0 : index
    %c0_7 = arith.constant 0 : index
    %9 = vector.load %arg3[%c0_6, %c0_7] : memref<512x256xbf16, #tpu.memory_space<vmem>>, vector<512x256xbf16>
    %cst_8 = arith.constant dense<0.000000e+00> : vector<16x256xf32>
    %10 = tpu.matmul %8, %9, %cst_8 {dimension_numbers = #tpu.dot_dimension_numbers<[1], [0], [0], [1], [0, 0, 1, 1], [], []>} : vector<16x512xbf16>, vector<512x256xbf16>, vector<16x256xf32> -> vector<16x256xf32>
    %c0_9 = arith.constant 0 : index
    %c512 = arith.constant 512 : index
    %11 = vector.load %arg5[%c0_9, %c512] : memref<1x896xf32, #tpu.memory_space<vmem>>, vector<1x256xf32>
    %12 = vector.broadcast %11 : vector<1x256xf32> to vector<16x256xf32>
    %13 = arith.addf %10, %12 : vector<16x256xf32>
    %cst_10 = arith.constant 0.000000e+00 : f32
    %14 = vector.broadcast %cst_10 : f32 to vector<16x256xf32>
    %15 = arith.maximumf %13, %14 : vector<16x256xf32>
    %16 = arith.truncf %15 : vector<16x256xf32> to vector<16x256xbf16>
    %c0_11 = arith.constant 0 : index
    %c0_12 = arith.constant 0 : index
    %17 = vector.load %arg4[%c0_11, %c0_12] : memref<256x128xbf16, #tpu.memory_space<vmem>>, vector<256x128xbf16>
    %cst_13 = arith.constant dense<0.000000e+00> : vector<16x128xf32>
    %18 = tpu.matmul %16, %17, %cst_13 {dimension_numbers = #tpu.dot_dimension_numbers<[1], [0], [0], [1], [0, 0, 1, 1], [], []>} : vector<16x256xbf16>, vector<256x128xbf16>, vector<16x128xf32> -> vector<16x128xf32>
    %c0_14 = arith.constant 0 : index
    %c768 = arith.constant 768 : index
    %19 = vector.load %arg5[%c0_14, %c768] : memref<1x896xf32, #tpu.memory_space<vmem>>, vector<1x128xf32>
    %20 = vector.broadcast %19 : vector<1x128xf32> to vector<16x128xf32>
    %21 = arith.addf %18, %20 : vector<16x128xf32>
    %22 = arith.truncf %21 : vector<16x128xf32> to vector<16x128xbf16>
    %c0_15 = arith.constant 0 : index
    %c0_16 = arith.constant 0 : index
    %23 = vector.load %arg6[%c0_15, %c0_16] : memref<16x128xbf16, #tpu.memory_space<vmem>>, vector<16x128xbf16>
    tpu.vector_store %arg6[%c0_15, %c0_16], %22 {strides = array<i32>} : memref<16x128xbf16, #tpu.memory_space<vmem>>, vector<16x128xbf16>,
    return
  }
  func.func @transform_0(%arg0: i32) -> (i32, i32) {
    %c0_i32 = arith.constant 0 : i32
    %c0_i32_0 = arith.constant 0 : i32
    return %arg0, %c0_i32 : i32, i32
  }
  func.func @transform_1(%arg0: i32) -> (i32, i32) {
    %c0_i32 = arith.constant 0 : i32
    %c0_i32_0 = arith.constant 0 : i32
    %c0_i32_1 = arith.constant 0 : i32
    return %c0_i32, %c0_i32_0 : i32, i32
  }
  func.func @transform_2(%arg0: i32) -> (i32, i32) {
    %c0_i32 = arith.constant 0 : i32
    %c0_i32_0 = arith.constant 0 : i32
    %c0_i32_1 = arith.constant 0 : i32
    return %c0_i32, %c0_i32_0 : i32, i32
  }
  func.func @transform_3(%arg0: i32) -> (i32, i32) {
    %c0_i32 = arith.constant 0 : i32
    %c0_i32_0 = arith.constant 0 : i32
    %c0_i32_1 = arith.constant 0 : i32
    return %c0_i32, %c0_i32_0 : i32, i32
  }
  func.func @transform_4(%arg0: i32) -> (i32, i32) {
    %c0_i32 = arith.constant 0 : i32
    %c0_i32_0 = arith.constant 0 : i32
    %c0_i32_1 = arith.constant 0 : i32
    return %c0_i32, %c0_i32_0 : i32, i32
  }
  func.func @transform_5(%arg0: i32) -> (i32, i32) {
    %c0_i32 = arith.constant 0 : i32
    %c0_i32_0 = arith.constant 0 : i32
    return %arg0, %c0_i32 : i32, i32
  }
}

</mosaic_0001>

<bundles_post_ra>
// kernel: tpu_custom_call.1
= control target key start
LH: loop header
LB: loop body
LE: loop exit
PB: predicated region body
PF: predicated region fallthrough
CT: control target
= control target key end

     0   :  { %10 = vsyncpa [#allocation3], 0  ;;  %s1672_s0 = inlined_call_operand.hbm [shape: bf16[16,128], index: 0, kind: input, shape index: {}]   ;;  %s1673_s1 = inlined_call_operand.hbm [shape: bf16[128,512], index: 1, kind: input, shape index: {}]   ;;  %s1674_s2 = inlined_call_operand.hbm [shape: bf16[512,256], index: 2, kind: input, shape index: {}]   ;;  %s1675_s3 = inlined_call_operand.hbm [shape: bf16[256,128], index: 3, kind: input, shape index: {}]   ;;  %s1676_s4 = inlined_call_operand.vmem [shape: f32[1,896], index: 4, kind: input, shape index: {}]   ;;  %s1677_s5 = inlined_call_operand.hbm [shape: bf16[16,128], index: 5, kind: output, shape index: {}]  }
   0x1   :  { %11 = vsyncpa [#allocation6], 0 }
   0x2   :  { %12 = vsyncpa [#allocation9], 0 }
   0x3   :  { %13 = vsyncpa [#allocation4], 0  ;;  %s1534_s18 = smov [#allocation5]   ;;  %s1416_s22 = scalar_lea.hbm %s1673_s1, 4096 }
   0x4   :  { %s31_s19 = sshll.u32 %s1534_s18, 4  ;;  %p1417_p0 = scmp.ne.s32.totalorder %s1673_s1, %s1416_s22  ;;  %s32_s19 = int_to_ptr.vmem [resolvable:$true] %s31_s19 }
   0x5   :  { %p1420_p1 = scmp.lt.u32.totalorder %s1416_s22, %s1673_s1 }
   0x7   :  { %p1422_p2 = pnand %p1420_p1, %p1417_p0 }
   0x9   :  { %1425 = shalt.err (!%p1422_p2)
}
   0xa   :  { %s1426_s27 = scalar_lea.vmem %s32_s19, 4096  ;;  %p1431_p4 = scmp.lt.s32.totalorder %s32_s19, %s32_s19 }
   0xb   :  { %p1427_p3 = scmp.ne.s32.totalorder %s32_s19, %s1426_s27  ;;  %p1432_p5 = scmp.lt.s32.totalorder %s1426_s27, %s1426_s27 }
   0xd   :  { %p1433_p6 = por %p1432_p5, %p1431_p4 }
   0xf   :  { %p1434_p7 = pnand %p1433_p6, %p1427_p3 }
  0x11   :  { %1437 = shalt.err (!%p1434_p7)
}
  0x12   :  { %s1535_s28 = smov 256   ;;  %s1536_s29 = smov 16  }
  0x13   :  { %37 = dma.hbm_to_vmem [thread:$0]  %s1673_s1, 4096, %s32_s19, [#allocation6], %s1535_s28, %s1535_s28, %s1536_s29  }
  0x14   :  { %s1537_s7 = smov [#allocation2]   ;;  %s1438_s11 = scalar_lea.hbm %s1672_s0, 128 }
  0x15   :  { %s19_s8 = sshll.u32 %s1537_s7, 4  ;;  %p1439_p8 = scmp.ne.s32.totalorder %s1672_s0, %s1438_s11  ;;  %s20_s8 = int_to_ptr.vmem [resolvable:$true] %s19_s8 }
  0x16   :  { %p1442_p9 = scmp.lt.u32.totalorder %s1438_s11, %s1672_s0 }
  0x18   :  { %p1444_p10 = pnand %p1442_p9, %p1439_p8 }
  0x1a   :  { %1447 = shalt.err (!%p1444_p10)
}
  0x1b   :  { %s1448_s16 = scalar_lea.vmem %s20_s8, 128  ;;  %p1453_p12 = scmp.lt.s32.totalorder %s20_s8, %s20_s8 }
  0x1c   :  { %p1449_p11 = scmp.ne.s32.totalorder %s20_s8, %s1448_s16  ;;  %p1454_p13 = scmp.lt.s32.totalorder %s1448_s16, %s1448_s16 }
  0x1e   :  { %p1455_p0 = por %p1454_p13, %p1453_p12 }
  0x20   :  { %p1456_p1 = pnand %p1455_p0, %p1449_p11 }
  0x22   :  { %1459 = shalt.err (!%p1456_p1)
}
  0x23   :  { %s1538_s1 = smov 64   ;;  %s1539_s17 = smov 4  }
  0x24   :  { %25 = dma.hbm_to_vmem [thread:$0]  %s1672_s0, 128, %s20_s8, [#allocation3], %s1538_s1, %s1538_s1, %s1539_s17  }
  0x25   :  { %s1540_s20 = smov [#allocation7]   ;;  %s1460_s24 = scalar_lea.hbm %s1674_s2, 8192 }
  0x26   :  { %s43_s21 = sshll.u32 %s1540_s20, 4  ;;  %p1461_p2 = scmp.ne.s32.totalorder %s1674_s2, %s1460_s24  ;;  %s44_s21 = int_to_ptr.vmem [resolvable:$true] %s43_s21 }
  0x27   :  { %p1464_p3 = scmp.lt.u32.totalorder %s1460_s24, %s1674_s2 }
  0x29   :  { %p1466_p4 = pnand %p1464_p3, %p1461_p2 }
  0x2b   :  { %1469 = shalt.err (!%p1466_p4)
}
  0x2c   :  { %s1470_s29 = scalar_lea.vmem %s44_s21, 8192  ;;  %p1475_p6 = scmp.lt.s32.totalorder %s44_s21, %s44_s21 }
  0x2d   :  { %p1471_p5 = scmp.ne.s32.totalorder %s44_s21, %s1470_s29  ;;  %p1476_p7 = scmp.lt.s32.totalorder %s1470_s29, %s1470_s29 }
  0x2f   :  { %p1477_p8 = por %p1476_p7, %p1475_p6 }
  0x31   :  { %p1478_p9 = pnand %p1477_p8, %p1471_p5 }
  0x33   :  { %1481 = shalt.err (!%p1478_p9)
}
  0x34   :  { %s1541_s0 = smov 128   ;;  %s1542_s30 = smov 8  }
  0x35   :  { %49 = dma.hbm_to_vmem [thread:$0]  %s1674_s2, 8192, %s44_s21, [#allocation6], %s1541_s0, %s1541_s0, %s1542_s30  }
  0x36   :  { %s1543_s8 = smov [#allocation8]   ;;  %s1482_s12 = scalar_lea.hbm %s1675_s3, 2048 }
  0x37   :  { %s55_s9 = sshll.u32 %s1543_s8, 4  ;;  %p1483_p10 = scmp.ne.s32.totalorder %s1675_s3, %s1482_s12  ;;  %s56_s9 = int_to_ptr.vmem [resolvable:$true] %s55_s9 }
  0x38   :  { %p1486_p11 = scmp.lt.u32.totalorder %s1482_s12, %s1675_s3 }
  0x3a   :  { %p1488_p12 = pnand %p1486_p11, %p1483_p10 }
  0x3c   :  { %1491 = shalt.err (!%p1488_p12)
}
  0x3d   :  { %s1492_s18 = scalar_lea.vmem %s56_s9, 2048  ;;  %p1497_p0 = scmp.lt.s32.totalorder %s56_s9, %s56_s9 }
  0x3e   :  { %p1493_p13 = scmp.ne.s32.totalorder %s56_s9, %s1492_s18  ;;  %p1498_p1 = scmp.lt.s32.totalorder %s1492_s18, %s1492_s18 }
  0x40   :  { %p1499_p2 = por %p1498_p1, %p1497_p0 }
  0x42   :  { %p1500_p3 = pnand %p1499_p2, %p1493_p13 }
  0x44   :  { %1503 = shalt.err (!%p1500_p3)
}
  0x45   :  { %61 = dma.hbm_to_vmem [thread:$0]  %s1675_s3, 2048, %s56_s9, [#allocation9], %s1538_s1, %s1538_s1, %s1539_s17  }
  0x46   :  { %1526 = dma.done.wait [#allocation3], 128  }
  0x47   :  { %1527 = vsyncadd [#allocation3], 4294967168 }
  0x48   :  { %1528 = dma.done.wait [#allocation6], 12288  }
  0x49   :  { %1529 = vsyncadd [#allocation6], 4294955008 }
  0x4a   :  { %1530 = dma.done.wait [#allocation9], 2048  }
  0x4b   :  { %1531 = vsyncadd [#allocation9], 4294965248  ;;  %v1544_v0 = vmov 0   ;;  %v1255_v1 = vld [vmem:[#allocation5 + $0x4] ss:$16 sps:$4 sm:$0xff]   ;;  %v1630_v23 = vld [vmem:[#allocation2] sm:$0xff]  }
  0x4c   :  { %331 = vmatprep.mubr.bf16.mxu1 %v1544_v0  ;;  %v1257_v2 = vld [vmem:[#allocation5] ss:$16 sps:$4 sm:$0xff]   ;;  %299 = vmatprep.subr.bf16.mxu1 %v1255_v1  ;;  %v1258_v3 = vld [vmem:[#allocation5 + $0x24] ss:$16 sps:$4 sm:$0xff]   ;;  %v1282_v22 = vld [vmem:[#allocation5 + $0xc] ss:$16 sps:$4 sm:$0xff]  }
  0x4d   :  { %300 = vmatpush1.bf16.msra.mxu1 %v1257_v2  ;;  %v1260_v4 = vld [vmem:[#allocation5 + $0x20] ss:$16 sps:$4 sm:$0xff]   ;;  %v1261_v5 = vld [vmem:[#allocation5 + $0x44] ss:$16 sps:$4 sm:$0xff]   ;;  %v1280_v25 = vld [vmem:[#allocation5 + $0x8] ss:$16 sps:$4 sm:$0xff]  }
  0x4e   :  { %301 = vmatprep.subr.bf16.mxu1 %v1258_v3  ;;  %v1263_v6 = vld [vmem:[#allocation5 + $0x40] ss:$16 sps:$4 sm:$0xff]   ;;  %v1264_v7 = vld [vmem:[#allocation5 + $0x64] ss:$16 sps:$4 sm:$0xff]   ;;  %v1285_v26 = vld [vmem:[#allocation5 + $0x2c] ss:$16 sps:$4 sm:$0xff]  }
  0x4f   :  { %v1266_v8 = vld [vmem:[#allocation5 + $0x60] ss:$16 sps:$4 sm:$0xff]   ;;  %v1267_v9 = vld [vmem:[#allocation5 + $0x84] ss:$16 sps:$4 sm:$0xff]   ;;  %v1283_v29 = vld [vmem:[#allocation5 + $0x28] ss:$16 sps:$4 sm:$0xff]  }
  0x50   :  { %v1269_v10 = vld [vmem:[#allocation5 + $0x80] ss:$16 sps:$4 sm:$0xff]   ;;  %v1270_v11 = vld [vmem:[#allocation5 + $0xa4] ss:$16 sps:$4 sm:$0xff]   ;;  %v1288_v31 = vld [vmem:[#allocation5 + $0x4c] ss:$16 sps:$4 sm:$0xff]  }
  0x51   :  { %302 = vmatpush1.bf16.msra.mxu1 %v1260_v4  ;;  %v1272_v12 = vld [vmem:[#allocation5 + $0xa0] ss:$16 sps:$4 sm:$0xff]   ;;  %v1273_v13 = vld [vmem:[#allocation5 + $0xc4] ss:$16 sps:$4 sm:$0xff]   ;;  %v1286_v33 = vld [vmem:[#allocation5 + $0x48] ss:$16 sps:$4 sm:$0xff]  }
  0x52   :  { %303 = vmatprep.subr.bf16.mxu1 %v1261_v5  ;;  %v1275_v14 = vld [vmem:[#allocation5 + $0xc0] ss:$16 sps:$4 sm:$0xff]   ;;  %v1304_v15 = vld [vmem:[#allocation7 + $0x4] ss:$8 sps:$4 sm:$0xff]   ;;  %v1307_v18 = vld [vmem:[#allocation7 + $0x14] ss:$8 sps:$4 sm:$0xff]  }
  0x53   :  { %v1306_v16 = vld [vmem:[#allocation7] ss:$8 sps:$4 sm:$0xff]   ;;  %v1276_v17 = vld [vmem:[#allocation5 + $0xe4] ss:$16 sps:$4 sm:$0xff]   ;;  %793 = vmatprep.subr.bf16.mxu0 %v1304_v15  ;;  %v1309_v19 = vld [vmem:[#allocation7 + $0x10] ss:$8 sps:$4 sm:$0xff]  }
  0x54   :  { %794 = vmatpush1.bf16.msra.mxu0 %v1306_v16  ;;  %v1278_v20 = vld [vmem:[#allocation5 + $0xe0] ss:$16 sps:$4 sm:$0xff]   ;;  %v1310_v21 = vld [vmem:[#allocation7 + $0x24] ss:$8 sps:$4 sm:$0xff]   ;;  %v1313_v27 = vld [vmem:[#allocation7 + $0x34] ss:$8 sps:$4 sm:$0xff]  }
  0x55   :  { %304 = vmatpush1.bf16.msra.mxu1 %v1263_v6  ;;  %795 = vmatprep.subr.bf16.mxu0 %v1307_v18  ;;  %v1312_v24 = vld [vmem:[#allocation7 + $0x20] ss:$8 sps:$4 sm:$0xff]   ;;  %v1315_v28 = vld [vmem:[#allocation7 + $0x30] ss:$8 sps:$4 sm:$0xff]   ;;  %v1316_v30 = vld [vmem:[#allocation7 + $0x44] ss:$8 sps:$4 sm:$0xff]  }
  0x56   :  { %305 = vmatprep.subr.bf16.mxu1 %v1264_v7  ;;  %v1318_v32 = vld [vmem:[#allocation7 + $0x40] ss:$8 sps:$4 sm:$0xff]   ;;  %v1319_v34 = vld [vmem:[#allocation7 + $0x54] ss:$8 sps:$4 sm:$0xff]   ;;  %v1321_v36 = vld [vmem:[#allocation7 + $0x50] ss:$8 sps:$4 sm:$0xff]  }
  0x57   :  { %v1291_v35 = vld [vmem:[#allocation5 + $0x6c] ss:$16 sps:$4 sm:$0xff]   ;;  %v1289_v37 = vld [vmem:[#allocation5 + $0x68] ss:$16 sps:$4 sm:$0xff]   ;;  %v1400_v3 = vld [vmem:[#allocation8 + $0x40] sm:$0xff]   ;;  %s1545_s25 = smov [#allocation10]  }
  0x58   :  { %796 = vmatpush1.bf16.msra.mxu0 %v1309_v19  ;;  %v1322_v38 = vld [vmem:[#allocation7 + $0x64] ss:$8 sps:$4 sm:$0xff]   ;;  %v1324_v40 = vld [vmem:[#allocation7 + $0x60] ss:$8 sps:$4 sm:$0xff]   ;;  %v1325_v42 = vld [vmem:[#allocation7 + $0x74] ss:$8 sps:$4 sm:$0xff]  }
  0x59   :  { %306 = vmatpush1.bf16.msra.mxu1 %v1266_v8  ;;  %797 = vmatprep.subr.bf16.mxu0 %v1310_v21  ;;  %v1294_v39 = vld [vmem:[#allocation5 + $0x8c] ss:$16 sps:$4 sm:$0xff]   ;;  %v1292_v41 = vld [vmem:[#allocation5 + $0x88] ss:$16 sps:$4 sm:$0xff]   ;;  %v1401_v4 = vld [vmem:[#allocation8] sm:$0xff]   ;;  %s1076_s26 = sshll.u32 %s1545_s25, 4  ;;  %s1077_s26 = int_to_ptr.vmem [resolvable:$true] %s1076_s26 }
  0x5a   :  { %307 = vmatprep.subr.bf16.mxu1 %v1267_v9  ;;  %v1297_v43 = vld [vmem:[#allocation5 + $0xac] ss:$16 sps:$4 sm:$0xff]   ;;  %v1327_v44 = vld [vmem:[#allocation7 + $0x70] ss:$8 sps:$4 sm:$0xff]   ;;  %v1330_v48 = vld [vmem:[#allocation7 + $0x80] ss:$8 sps:$4 sm:$0xff]   ;;  %p1509_p5 = scmp.lt.s32.totalorder %s1077_s26, %s1077_s26 }
  0x5b   :  { %v1295_v45 = vld [vmem:[#allocation5 + $0xa8] ss:$16 sps:$4 sm:$0xff]   ;;  %v1328_v46 = vld [vmem:[#allocation7 + $0x84] ss:$8 sps:$4 sm:$0xff]   ;;  %v1331_v50 = vld [vmem:[#allocation7 + $0x94] ss:$8 sps:$4 sm:$0xff]  }
  0x5c   :  { %798 = vmatpush1.bf16.msra.mxu0 %v1312_v24  ;;  %v1300_v47 = vld [vmem:[#allocation5 + $0xcc] ss:$16 sps:$4 sm:$0xff]   ;;  %v1298_v49 = vld [vmem:[#allocation5 + $0xc8] ss:$16 sps:$4 sm:$0xff]   ;;  %v1404_v7 = vld [vmem:[#allocation8 + $0x50] sm:$0xff]   ;;  %s1504_s27 = scalar_lea.vmem %s1077_s26, 128 }
  0x5d   :  { %308 = vmatpush1.bf16.msra.mxu1 %v1269_v10  ;;  %799 = vmatprep.subr.bf16.mxu0 %v1313_v27  ;;  %v1303_v51 = vld [vmem:[#allocation5 + $0xec] ss:$16 sps:$4 sm:$0xff]   ;;  %v1333_v52 = vld [vmem:[#allocation7 + $0x90] ss:$8 sps:$4 sm:$0xff]   ;;  %v1336_v55 = vld [vmem:[#allocation7 + $0xa0] ss:$8 sps:$4 sm:$0xff]   ;;  %p1505_p4 = scmp.ne.s32.totalorder %s1077_s26, %s1504_s27  ;;  %p1510_p6 = scmp.lt.s32.totalorder %s1504_s27, %s1504_s27 }
  0x5e   :  { %309 = vmatprep.subr.bf16.mxu1 %v1270_v11  ;;  %v1301_v53 = vld [vmem:[#allocation5 + $0xe8] ss:$16 sps:$4 sm:$0xff]   ;;  %v1334_v54 = vld [vmem:[#allocation7 + $0xa4] ss:$8 sps:$4 sm:$0xff]   ;;  %v1337_v56 = vld [vmem:[#allocation7 + $0xb4] ss:$8 sps:$4 sm:$0xff]  }
  0x5f   :  { %v1339_v57 = vld [vmem:[#allocation7 + $0xb0] ss:$8 sps:$4 sm:$0xff]   ;;  %v1340_v58 = vld [vmem:[#allocation7 + $0xc4] ss:$8 sps:$4 sm:$0xff]   ;;  %v1342_v59 = vld [vmem:[#allocation7 + $0xc0] ss:$8 sps:$4 sm:$0xff]   ;;  %p1511_p7 = por %p1510_p6, %p1509_p5 }
  0x60   :  { %800 = vmatpush1.bf16.msra.mxu0 %v1315_v28  ;;  %v1343_v60 = vld [vmem:[#allocation7 + $0xd4] ss:$8 sps:$4 sm:$0xff]   ;;  %v1345_v61 = vld [vmem:[#allocation7 + $0xd0] ss:$8 sps:$4 sm:$0xff]   ;;  %v1346_v62 = vld [vmem:[#allocation7 + $0xe4] ss:$8 sps:$4 sm:$0xff]  }
  0x61   :  { %310 = vmatpush1.bf16.msra.mxu1 %v1272_v12  ;;  %801 = vmatprep.subr.bf16.mxu0 %v1316_v30  ;;  %v1348_v63 = vld [vmem:[#allocation7 + $0xe0] ss:$8 sps:$4 sm:$0xff]   ;;  %v1351_v1 = vld [vmem:[#allocation7 + $0xf0] ss:$8 sps:$4 sm:$0xff]   ;;  %v1354_v2 = vld [vmem:[#allocation7 + $0x104] ss:$8 sps:$4 sm:$0xff]   ;;  %p1512_p8 = pnand %p1511_p7, %p1505_p4 }
  0x62   :  { %311 = vmatprep.subr.bf16.mxu1 %v1273_v13  ;;  %v1402_v5 = vld [vmem:[#allocation8 + $0x48] sm:$0xff]   ;;  %v1405_v8 = vld [vmem:[#allocation8 + $0x10] sm:$0xff]   ;;  %v1406_v9 = vld [vmem:[#allocation8 + $0x58] sm:$0xff]  }
  0x63   :  { %v1403_v6 = vld [vmem:[#allocation8 + $0x8] sm:$0xff]   ;;  %v1407_v10 = vld [vmem:[#allocation8 + $0x18] sm:$0xff]   ;;  %v1408_v11 = vld [vmem:[#allocation8 + $0x60] sm:$0xff]  }
  0x64   :  { %802 = vmatpush1.bf16.msra.mxu0 %v1318_v32  ;;  %v1409_v12 = vld [vmem:[#allocation8 + $0x20] sm:$0xff]   ;;  %v1410_v13 = vld [vmem:[#allocation8 + $0x68] sm:$0xff]  }
  0x65   :  { %312 = vmatpush1.bf16.msra.mxu1 %v1275_v14  ;;  %803 = vmatprep.subr.bf16.mxu0 %v1319_v34  ;;  %v113_v14 = vlaneseq }
  0x66   :  { %313 = vmatprep.subr.bf16.mxu1 %v1276_v17  ;;  %v111_v17 = vld [vmem:[%s1676_s4] sm:$0xf] }
  0x67   :  { %v1634_v15 = vshrl.u32 %v113_v14, 7  ;;  %v1393_v14 = vld [vmem:[#allocation7 + $0x1d4] ss:$8 sps:$4 sm:$0xff]  }
  0x68   :  { %804 = vmatpush1.bf16.msra.mxu0 %v1321_v36  ;;  %v1357_v36 = vld [vmem:[#allocation7 + $0x114] ss:$8 sps:$4 sm:$0xff]  }
  0x69   :  { %314 = vmatpush1.bf16.msra.mxu1 %v1278_v20  ;;  %805 = vmatprep.subr.bf16.mxu0 %v1322_v38  ;;  %v115_v16 = vsub.s32 0, %v1634_v15  ;;  %v119_v18 = vsub.s32 1, %v1634_v15  ;;  %v1360_v38 = vld [vmem:[#allocation7 + $0x124] ss:$8 sps:$4 sm:$0xff]  }
  0x6a   :  { %342 = vmatprep.subr.bf16.mxu1 %v1282_v22 }
  0x6b   :  { %v116_v19 = vrot.slane %v111_v17, %v115_v16  ;;  %v120_v20 = vrot.slane %v111_v17, %v119_v18 }
  0x6c   :  { %332 = vmatmul.mubr.bf16.vlgmr.msra.gmra.mrb[0].mxu1 %v1630_v23  ;;  %806 = vmatpush1.bf16.msra.mxu0 %v1324_v40  ;;  %v1363_v40 = vld [vmem:[#allocation7 + $0x134] ss:$8 sps:$4 sm:$0xff]  }
  0x6d   :  { %343 = vmatpush1.bf16.msra.mxu1 %v1280_v25  ;;  %374 = vmatprep.mubr.bf16.mxu1 %v1544_v0  ;;  %v1349_v0 = vld [vmem:[#allocation7 + $0xf4] ss:$8 sps:$4 sm:$0xff]  }
  0x6e   :  { %344 = vmatprep.subr.bf16.mxu1 %v1285_v26  ;;  %807 = vmatprep.subr.bf16.mxu0 %v1325_v42  ;;  %v1366_v42 = vld [vmem:[#allocation7 + $0x144] ss:$8 sps:$4 sm:$0xff]  }
  0x70   :  { %808 = vmatpush1.bf16.msra.mxu0 %v1327_v44  ;;  %v1369_v44 = vld [vmem:[#allocation7 + $0x154] ss:$8 sps:$4 sm:$0xff]  }
  0x71   :  { %345 = vmatpush1.bf16.msra.mxu1 %v1283_v29  ;;  %809 = vmatprep.subr.bf16.mxu0 %v1328_v46  ;;  %v127_v46 = vsub.s32 3, %v1634_v15 }
  0x72   :  { %346 = vmatprep.subr.bf16.mxu1 %v1288_v31 }
  0x74   :  { %810 = vmatpush1.bf16.msra.mxu0 %v1330_v48  ;;  %v1372_v48 = vld [vmem:[#allocation7 + $0x164] ss:$8 sps:$4 sm:$0xff]  }
  0x75   :  { %347 = vmatpush1.bf16.msra.mxu1 %v1286_v33  ;;  %811 = vmatprep.subr.bf16.mxu0 %v1331_v50  ;;  %v128_v50 = vrot.slane %v111_v17, %v127_v46  ;;  %v1187_v46 = vld [vmem:[%s1676_s4 + $0x6] ss:$0 sm:$0xff] }
  0x76   :  { %348 = vmatprep.subr.bf16.mxu1 %v1291_v35  ;;  %v1352_v35 = vld [vmem:[#allocation7 + $0x100] ss:$8 sps:$4 sm:$0xff]  }
  0x78   :  { %812 = vmatpush1.bf16.msra.mxu0 %v1333_v52 }
  0x79   :  { %349 = vmatpush1.bf16.msra.mxu1 %v1289_v37  ;;  %813 = vmatprep.subr.bf16.mxu0 %v1334_v54  ;;  %v1355_v37 = vld [vmem:[#allocation7 + $0x110] ss:$8 sps:$4 sm:$0xff]  }
  0x7a   :  { %350 = vmatprep.subr.bf16.mxu1 %v1294_v39  ;;  %v1358_v39 = vld [vmem:[#allocation7 + $0x120] ss:$8 sps:$4 sm:$0xff]  }
  0x7c   :  { %814 = vmatpush1.bf16.msra.mxu0 %v1336_v55 }
  0x7d   :  { %351 = vmatpush1.bf16.msra.mxu1 %v1292_v41  ;;  %815 = vmatprep.subr.bf16.mxu0 %v1337_v56  ;;  %v1361_v41 = vld [vmem:[#allocation7 + $0x130] ss:$8 sps:$4 sm:$0xff]  }
  0x7e   :  { %352 = vmatprep.subr.bf16.mxu1 %v1297_v43  ;;  %v1364_v43 = vld [vmem:[#allocation7 + $0x140] ss:$8 sps:$4 sm:$0xff]  }
  0x80   :  { %816 = vmatpush1.bf16.msra.mxu0 %v1339_v57 }
  0x81   :  { %353 = vmatpush1.bf16.msra.mxu1 %v1295_v45  ;;  %817 = vmatprep.subr.bf16.mxu0 %v1340_v58  ;;  %v123_v45 = vsub.s32 2, %v1634_v15 }
  0x82   :  { %354 = vmatprep.subr.bf16.mxu1 %v1300_v47  ;;  %v1367_v47 = vld [vmem:[#allocation7 + $0x150] ss:$8 sps:$4 sm:$0xff]  }
  0x84   :  { %818 = vmatpush1.bf16.msra.mxu0 %v1342_v59 }
  0x85   :  { %355 = vmatpush1.bf16.msra.mxu1 %v1298_v49  ;;  %819 = vmatprep.subr.bf16.mxu0 %v1343_v60  ;;  %v124_v49 = vrot.slane %v111_v17, %v123_v45  ;;  %v1391_v17 = vld [vmem:[#allocation7 + $0x1d0] ss:$8 sps:$4 sm:$0xff]  }
  0x86   :  { %356 = vmatprep.subr.bf16.mxu1 %v1303_v51  ;;  %v1370_v51 = vld [vmem:[#allocation7 + $0x160] ss:$8 sps:$4 sm:$0xff]  }
  0x88   :  { %820 = vmatpush1.bf16.msra.mxu0 %v1345_v61  ;;  %v1373_v61 = vld [vmem:[#allocation7 + $0x170] ss:$8 sps:$4 sm:$0xff]  }
  0x89   :  { %357 = vmatpush1.bf16.msra.mxu1 %v1301_v53  ;;  %821 = vmatprep.subr.bf16.mxu0 %v1346_v62  ;;  %v1375_v53 = vld [vmem:[#allocation7 + $0x174] ss:$8 sps:$4 sm:$0xff]  }
  0x8a   :  { %1213 = vmatprep.subr.bf16.mxu1 %v1400_v3 }
  0x8c   :  { %375 = vmatmul.mubr.bf16.vlgmr.msra.gmra.mrb[4].mxu1 %v1630_v23  ;;  %822 = vmatpush1.bf16.msra.mxu0 %v1348_v63 }
  0x8d   :  { %823 = vmatprep.subr.bf16.mxu0 %v1349_v0  ;;  %1214 = vmatpush3.bf16.msra.mxu1 %v1401_v4  ;;  %v1378_v0 = vld [vmem:[#allocation7 + $0x184] ss:$8 sps:$4 sm:$0xff]   ;;  %v1376_v4 = vld [vmem:[#allocation7 + $0x180] ss:$8 sps:$4 sm:$0xff]  }
  0x8e   :  { %1215 = vmatprep.subr.bf16.mxu1 %v1402_v5 }
  0x90   :  { %824 = vmatpush1.bf16.msra.mxu0 %v1351_v1 }
  0x91   :  { %836 = vmatprep.subr.bf16.mxu0 %v1354_v2  ;;  %1216 = vmatpush3.bf16.msra.mxu1 %v1403_v6  ;;  %v1381_v6 = vld [vmem:[#allocation7 + $0x194] ss:$8 sps:$4 sm:$0xff]  }
  0x92   :  { %1217 = vmatprep.subr.bf16.mxu1 %v1404_v7  ;;  %v1379_v7 = vld [vmem:[#allocation7 + $0x190] ss:$8 sps:$4 sm:$0xff]  }
  0x95   :  { %1218 = vmatpush3.bf16.msra.mxu1 %v1405_v8  ;;  %v1384_v8 = vld [vmem:[#allocation7 + $0x1a4] ss:$8 sps:$4 sm:$0xff]  }
  0x96   :  { %1219 = vmatprep.subr.bf16.mxu1 %v1406_v9  ;;  %v1382_v9 = vld [vmem:[#allocation7 + $0x1a0] ss:$8 sps:$4 sm:$0xff]  }
  0x99   :  { %1220 = vmatpush3.bf16.msra.mxu1 %v1407_v10  ;;  %v1387_v10 = vld [vmem:[#allocation7 + $0x1b4] ss:$8 sps:$4 sm:$0xff]  }
  0x9a   :  { %1221 = vmatprep.subr.bf16.mxu1 %v1408_v11  ;;  %v1385_v11 = vld [vmem:[#allocation7 + $0x1b0] ss:$8 sps:$4 sm:$0xff]  }
  0x9d   :  { %1222 = vmatpush3.bf16.msra.mxu1 %v1409_v12  ;;  %v1390_v12 = vld [vmem:[#allocation7 + $0x1c4] ss:$8 sps:$4 sm:$0xff]  }
  0x9e   :  { %1223 = vmatprep.subr.bf16.mxu1 %v1410_v13  ;;  %v1388_v13 = vld [vmem:[#allocation7 + $0x1c0] ss:$8 sps:$4 sm:$0xff]  }
 0x13f   :  { %v333_v21 = vpop.f32.mrb[0].mxu1 }
 0x140   :  { %v334_v22 = vadd.f32 %v333_v21, %v116_v19  ;;  %v335_v23 = vpop.f32.mrb[1].mxu1  ;;  %v1399_v21 = vld [vmem:[#allocation7 + $0x1f4] ss:$8 sps:$4 sm:$0xff]  }
 0x141   :  { %v336_v24 = vadd.f32 %v335_v23, %v120_v20  ;;  %v337_v25 = vpop.f32.mrb[2].mxu1  ;;  %v1411_v23 = vld [vmem:[#allocation8 + $0x28] sm:$0xff]  }
 0x142   :  { %v338_v26 = vadd.f32 %v337_v25, %v116_v19  ;;  %v339_v27 = vpop.f32.mrb[3].mxu1  ;;  %v385_v29 = vmax.f32 %v334_v22, 0.0  ;;  %v1396_v19 = vld [vmem:[#allocation7 + $0x1e4] ss:$8 sps:$4 sm:$0xff]   ;;  %v1397_v22 = vld [vmem:[#allocation7 + $0x1f0] ss:$8 sps:$4 sm:$0xff]   ;;  %1224 = vmatpush3.bf16.msra.mxu1 %v1411_v23 }
 0x143   :  { %v340_v28 = vadd.f32 %v339_v27, %v120_v20  ;;  %v386_v31 = vmax.f32 %v336_v24, 0.0  ;;  %v1394_v20 = vld [vmem:[#allocation7 + $0x1e0] ss:$8 sps:$4 sm:$0xff]   ;;  %v1412_v24 = vld [vmem:[#allocation8 + $0x70] sm:$0xff]   ;;  %v1415_v27 = vld [vmem:[#allocation8 + $0x38] sm:$0xff]  }
 0x144   :  { %v389_v30 = vmax.f32 %v338_v26, 0.0  ;;  %v1413_v25 = vld [vmem:[#allocation8 + $0x30] sm:$0xff]   ;;  %1225 = vmatprep.subr.bf16.mxu1 %v1412_v24  ;;  %v1414_v26 = vld [vmem:[#allocation8 + $0x78] sm:$0xff]  }
 0x145   :  { %v390_v32 = vmax.f32 %v340_v28, 0.0  ;;  %v461_v28 = vld [vmem:[%s1676_s4 + $0x4] sm:$0x3] }
 0x146   :  { %v393_v33 = vpack.c.bf16 %v389_v30, %v385_v29  ;;  %1226 = vmatpush3.bf16.msra.mxu1 %v1413_v25  ;;  %v466_v29 = vrot.slane %v461_v28, %v115_v16  ;;  %v470_v30 = vrot.slane %v461_v28, %v119_v18 }
 0x147   :  { %v394_v34 = vpack.c.bf16 %v390_v32, %v386_v31  ;;  %1227 = vmatprep.subr.bf16.mxu1 %v1414_v26 }
 0x149   :  { %825 = vmatprep.mubr.bf16.mxu0 %v394_v34 }
 0x14a   :  { %826 = vmatmul.mubr.bf16.vlgmr.msra.gmra.mrb[0].mxu0 %v393_v33  ;;  %1228 = vmatpush3.bf16.msra.mxu1 %v1415_v27 }
 0x14b   :  { %837 = vmatpush1.bf16.msra.mxu0 %v1352_v35 }
 0x14c   :  { %838 = vmatprep.subr.bf16.mxu0 %v1357_v36 }
 0x14f   :  { %839 = vmatpush1.bf16.msra.mxu0 %v1355_v37 }
 0x150   :  { %840 = vmatprep.subr.bf16.mxu0 %v1360_v38 }
 0x153   :  { %841 = vmatpush1.bf16.msra.mxu0 %v1358_v39 }
 0x154   :  { %842 = vmatprep.subr.bf16.mxu0 %v1363_v40 }
 0x157   :  { %843 = vmatpush1.bf16.msra.mxu0 %v1361_v41 }
 0x158   :  { %844 = vmatprep.subr.bf16.mxu0 %v1366_v42 }
 0x15b   :  { %845 = vmatpush1.bf16.msra.mxu0 %v1364_v43 }
 0x15c   :  { %846 = vmatprep.subr.bf16.mxu0 %v1369_v44 }
 0x15f   :  { %847 = vmatpush1.bf16.msra.mxu0 %v1367_v47  ;;  %v376_v52 = vpop.f32.mrb[4].mxu1 }
 0x160   :  { %848 = vmatprep.subr.bf16.mxu0 %v1372_v48  ;;  %v377_v54 = vadd.f32 %v376_v52, %v124_v49  ;;  %v378_v55 = vpop.f32.mrb[5].mxu1 }
 0x161   :  { %v379_v56 = vadd.f32 %v378_v55, %v128_v50  ;;  %v380_v57 = vpop.f32.mrb[6].mxu1 }
 0x162   :  { %v387_v58 = vmax.f32 %v377_v54, 0.0  ;;  %v381_v59 = vadd.f32 %v380_v57, %v124_v49  ;;  %v382_v60 = vpop.f32.mrb[7].mxu1 }
 0x163   :  { %849 = vmatpush1.bf16.msra.mxu0 %v1370_v51  ;;  %v388_v62 = vmax.f32 %v379_v56, 0.0  ;;  %v383_v63 = vadd.f32 %v382_v60, %v128_v50 }
 0x164   :  { %850 = vmatprep.subr.bf16.mxu0 %v1375_v53  ;;  %v391_v1 = vmax.f32 %v381_v59, 0.0 }
 0x165   :  { %v392_v2 = vmax.f32 %v383_v63, 0.0 }
 0x166   :  { %v395_v3 = vpack.c.bf16 %v391_v1, %v387_v58 }
 0x167   :  { %851 = vmatpush1.bf16.msra.mxu0 %v1373_v61  ;;  %v396_v5 = vpack.c.bf16 %v392_v2, %v388_v62 }
 0x168   :  { %852 = vmatprep.subr.bf16.mxu0 %v1378_v0 }
 0x169   :  { %868 = vmatprep.mubr.bf16.mxu0 %v396_v5 }
 0x16b   :  { %853 = vmatpush1.bf16.msra.mxu0 %v1376_v4 }
 0x16c   :  { %854 = vmatprep.subr.bf16.mxu0 %v1381_v6 }
 0x16f   :  { %855 = vmatpush1.bf16.msra.mxu0 %v1379_v7 }
 0x170   :  { %856 = vmatprep.subr.bf16.mxu0 %v1384_v8 }
 0x173   :  { %857 = vmatpush1.bf16.msra.mxu0 %v1382_v9 }
 0x174   :  { %858 = vmatprep.subr.bf16.mxu0 %v1387_v10 }
 0x177   :  { %859 = vmatpush1.bf16.msra.mxu0 %v1385_v11 }
 0x178   :  { %860 = vmatprep.subr.bf16.mxu0 %v1390_v12 }
 0x17b   :  { %861 = vmatpush1.bf16.msra.mxu0 %v1388_v13 }
 0x17c   :  { %862 = vmatprep.subr.bf16.mxu0 %v1393_v14 }
 0x17f   :  { %863 = vmatpush1.bf16.msra.mxu0 %v1391_v17 }
 0x180   :  { %864 = vmatprep.subr.bf16.mxu0 %v1396_v19 }
 0x183   :  { %865 = vmatpush1.bf16.msra.mxu0 %v1394_v20 }
 0x184   :  { %866 = vmatprep.subr.bf16.mxu0 %v1399_v21 }
 0x187   :  { %867 = vmatpush1.bf16.msra.mxu0 %v1397_v22 }
 0x18a   :  { %869 = vmatmul.mubr.bf16.vlgmr.msra.gmra.mrb[0].mxu0 %v395_v3 }
 0x25d   :  { %v870_v31 = vpop.f32.mrb[0].mxu0 }
 0x25e   :  { %v1235_v32 = vadd.f32 %v870_v31, %v466_v29  ;;  %v872_v33 = vpop.f32.mrb[1].mxu0 }
 0x25f   :  { %v1236_v34 = vadd.f32 %v872_v33, %v470_v30  ;;  %v874_v35 = vpop.f32.mrb[2].mxu0 }
 0x260   :  { %v1237_v36 = vadd.f32 %v874_v35, %v466_v29  ;;  %v876_v37 = vpop.f32.mrb[3].mxu0  ;;  %v879_v39 = vmax.f32 %v1235_v32, 0.0 }
 0x261   :  { %v1238_v38 = vadd.f32 %v876_v37, %v470_v30  ;;  %v880_v41 = vmax.f32 %v1236_v34, 0.0 }
 0x262   :  { %v881_v40 = vmax.f32 %v1237_v36, 0.0 }
 0x263   :  { %v882_v42 = vmax.f32 %v1238_v38, 0.0 }
 0x264   :  { %v883_v43 = vpack.c.bf16 %v881_v40, %v879_v39 }
 0x265   :  { %v884_v44 = vpack.c.bf16 %v882_v42, %v880_v41 }
 0x267   :  { %1052 = vmatprep.mubr.bf16.mxu1 %v884_v44 }
 0x268   :  { %1053 = vmatmul.mubr.bf16.vlgmr.msra.gmra.mrb[8].mxu1 %v883_v43 }
 0x33b   :  { %v1229_v16 = vpop.f32.mrb[8].mxu1 }
 0x33c   :  { %v1230_v45 = vpop.f32.mrb[9].mxu1 }
 0x33d   :  { %v1231_v15 = vadd.f32 %v1230_v45, %v1229_v16  ;;  %v1232_v18 = vpop.f32.mrb[10].mxu1 }
 0x33e   :  { %v1233_v47 = vpop.f32.mrb[11].mxu1 }
 0x33f   :  { %v1234_v48 = vadd.f32 %v1233_v47, %v1232_v18  ;;  %v1055_v49 = vadd.f32 %v1231_v15, %v1187_v46 }
 0x341   :  { %v1058_v50 = vadd.f32 %v1234_v48, %v1187_v46 }
 0x343   :  { %v1211_v51 = vpack.c.bf16 %v1058_v50, %v1055_v49 }
 0x345   :  { %1212 = vst [vmem:[#allocation10] sm:$0xff] %v1211_v51  }
 0x346   :  { %1515 = shalt.err (!%p1512_p8)
}
 0x347   :  { %s1516_s4 = scalar_lea.hbm %s1677_s5, 128 }
 0x348   :  { %p1517_p9 = scmp.ne.s32.totalorder %s1677_s5, %s1516_s4  ;;  %p1520_p10 = scmp.lt.u32.totalorder %s1516_s4, %s1677_s5 }
 0x34a   :  { %p1522_p11 = pnand %p1520_p10, %p1517_p9 }
 0x34c   :  { %1525 = shalt.err (!%p1522_p11)
}
 0x34d   :  { %1082 = dma.vmem_to_hbm [thread:$0]  %s1077_s26, 128, %s1677_s5, [#allocation4], %s1538_s1, %s1538_s1, %s1539_s17  }
 0x34e   :  { %1532 = dma.done.wait [#allocation4], 128  }
 0x34f   :  { %1533 = vsyncadd [#allocation4], 4294967168 }
 0x350   :  { %1086 = vsyncpa [#allocation3], 1 }
 0x351   :  { %1087 = vsyncpa [#allocation6], 1 }
 0x352   :  { %1088 = vsyncpa [#allocation9], 1 }
 0x353   :  { %1089 = vsyncpa [#allocation4], 1 }

</bundles_post_ra>
